<compile_context>
chip_gen: v7x
topology: tpu7x:2x2x1
jax: 0.10.0
libtpu: 0.0.40
codegen_flags: <defaults>
</compile_context>

<pallas_src>
import functools

import jax
import jax.numpy as jnp
from jax.experimental import pallas as pl
from jax.experimental.pallas import tpu as pltpu


# --------------------------------- kernels --------------------------------- #


def _stats_kernel(x_ref, sum_ref, ssq_ref):
    """Accumulate per-channel sum / sum-of-squares over a (TB, C, TN) tile."""

    @pl.when(pl.program_id(1) == 0)
    def _init():
        sum_ref[...] = jnp.zeros_like(sum_ref)
        ssq_ref[...] = jnp.zeros_like(ssq_ref)

    x = x_ref[...].astype(jnp.float32)                    # (TB, C, TN)
    s = jnp.sum(x, axis=2, keepdims=True)                 # (TB, C, 1)
    ss = jnp.sum(x * x, axis=2, keepdims=True)            # (TB, C, 1)
    sum_ref[...] += jnp.sum(s, axis=0, keepdims=True)     # (1, C, 1)
    ssq_ref[...] += jnp.sum(ss, axis=0, keepdims=True)    # (1, C, 1)


def _normalize_kernel(x_ref, mean_ref, inv_ref, o_ref, *, do_mean, do_norm):
    """out = (x - mean_c) * inv_std_c on a (TB, C, TN) tile."""
    out = x_ref[...].astype(jnp.float32)                  # (TB, C, TN)
    if do_mean:
        out = out - mean_ref[...][None, :, :]             # (1, C, 1) broadcast
    if do_norm:
        out = out * inv_ref[...][None, :, :]
    o_ref[...] = out.astype(o_ref.dtype)


# ------------------------------ tiling helpers ------------------------------ #

_MAX_TILE_BYTES = 2 * 1024 * 1024  # per-block budget; 4 buffered blocks ~ 8 MiB


def _choose_n_tile(hw, c, max_tile_bytes=_MAX_TILE_BYTES, lane=128):
    """Largest lane-dense tile of the H*W axis that fits the VMEM budget."""
    bytes_per_row = c * 4  # f32 compute
    if hw * bytes_per_row <= max_tile_bytes:
        return hw                                  # full axis resident
    cap = max(lane, (max_tile_bytes // bytes_per_row) // lane * lane)
    start = min(cap, (hw // lane) * lane)
    for cand in range(start, 0, -lane):            # multiples of 128 only
        if hw % cand == 0:
            return cand
    return hw  # no 128-multiple divisor: fall back to the full (legal) axis


def _choose_b_tile(b, c, tn, max_tile_bytes=_MAX_TILE_BYTES):
    """Largest batch tile (divisor of B) keeping the block under budget."""
    bytes_per_batch = c * tn * 4
    max_tb = max(1, max_tile_bytes // bytes_per_batch)
    tb = 1
    for cand in range(1, b + 1):
        if b % cand == 0 and cand <= max_tb:
            tb = cand
    return tb


# --------------------------------- forward ---------------------------------- #


def norm_layer_forward(x, *, eps=1e-5, mean=True, norm=True):
    """NormLayer forward (default batch-norm-statistics branch), NCHW in/out."""
    B, C, H, W = x.shape
    HW = H * W
    numel = float(B * HW)

    # Free reshape (contiguous merge of the last two dims) -- no HBM traffic.
    x3 = x.reshape(B, C, HW)

    tn = _choose_n_tile(HW, C)
    tb = _choose_b_tile(B, C, tn)
    n_tiles = HW // tn
    b_tiles = B // tb

    # ---- Pass 1: per-channel partial sums / sums of squares ----------------
    sum_part, ssq_part = pl.pallas_call(
        _stats_kernel,
        out_shape=(
            jax.ShapeDtypeStruct((b_tiles, C, 1), jnp.float32),
            jax.ShapeDtypeStruct((b_tiles, C, 1), jnp.float32),
        ),
        grid=(b_tiles, n_tiles),
        in_specs=[pl.BlockSpec((tb, C, tn), lambda b, n: (b, 0, n))],
        out_specs=(
            pl.BlockSpec((1, C, 1), lambda b, n: (b, 0, 0)),
            pl.BlockSpec((1, C, 1), lambda b, n: (b, 0, 0)),
        ),
        compiler_params=pltpu.CompilerParams(
            dimension_semantics=("parallel", "arbitrary")
        ),
    )(x3)

    # ---- Tiny (C,)-sized finalize, computed exactly once -------------------
    sum_c = jnp.sum(sum_part, axis=0)                     # (C, 1)
    ssq_c = jnp.sum(ssq_part, axis=0)                     # (C, 1)
    mean_c = sum_c / numel
    # E[x^2] - E[x]^2 can go slightly negative under cancellation; clamp so
    # rsqrt never sees a negative argument.
    bias_var = jnp.maximum(ssq_c / numel - mean_c * mean_c, 0.0)
    inv_std_c = jax.lax.rsqrt(bias_var + eps)             # (C, 1)

    # ---- Pass 2: normalize (fully parallel, pipelined tiles) ----------------
    if n_tiles >= 3:
        # Deeper buffering hides exposed per-step DMA latency (trivial compute,
        # fast HBM, esp. v7x). Only engaged when there are enough tiles.
        x_spec = pl.BlockSpec(
            (tb, C, tn), lambda b, n: (b, 0, n), pipeline_mode=pl.Buffered(3)
        )
    else:
        x_spec = pl.BlockSpec((tb, C, tn), lambda b, n: (b, 0, n))

    kernel2 = functools.partial(_normalize_kernel, do_mean=mean, do_norm=norm)
    out3 = pl.pallas_call(
        kernel2,
        out_shape=jax.ShapeDtypeStruct((B, C, HW), x.dtype),
        grid=(b_tiles, n_tiles),
        in_specs=[
            x_spec,
            pl.BlockSpec((C, 1), lambda b, n: (0, 0)),
            pl.BlockSpec((C, 1), lambda b, n: (0, 0)),
        ],
        out_specs=pl.BlockSpec((tb, C, tn), lambda b, n: (b, 0, n)),
        compiler_params=pltpu.CompilerParams(
            dimension_semantics=("parallel", "parallel")
        ),
    )(x3, mean_c, inv_std_c)

    return out3.reshape(B, C, H, W)


# -------------------------------- reference --------------------------------- #


def _reference(x, eps=1e-5):
    # Pure-JAX mirror of the PyTorch default branch.
    B, C, H, W = x.shape
    numel = B * H * W
    xc = jnp.transpose(x, (1, 0, 2, 3)).reshape(C, numel)
    s = xc.sum(1)
    ss = (xc * xc).sum(1)
    mu = s / numel
    bias_var = (ss - s * mu) / numel
    inv_std = 1.0 / jnp.sqrt(bias_var + eps)
    out = (xc - mu[:, None]) * inv_std[:, None]
    return jnp.transpose(out.reshape(C, B, H, W), (1, 0, 2, 3))


if __name__ == "__main__":
    key = jax.random.PRNGKey(0)
    B, C, H, W = 2, 4, 16, 16
    x = jax.random.normal(key, (B, C, H, W), dtype=jnp.float32) * 2.0 + 0.5

    fwd = jax.jit(
        functools.partial(norm_layer_forward, eps=1e-5, mean=True, norm=True)
    )
    out = jax.block_until_ready(fwd(x))

    ref = _reference(x)
    assert out.shape == (B, C, H, W)
    assert jnp.allclose(out, ref, atol=1e-4, rtol=1e-4), "mismatch vs reference"

    print("KERNEL_OK")
</pallas_src>

<mosaic_0001>
module attributes {stable_mosaic.version = 11 : i64} {
  func.func @_stats_kernel(%arg0: i32, %arg1: i32, %arg2: memref<2x4x256xf32, #tpu.memory_space<vmem>>, %arg3: memref<1x4x1xf32, #tpu.memory_space<vmem>>, %arg4: memref<1x4x1xf32, #tpu.memory_space<vmem>>) attributes {dimension_semantics = [#tpu.dimension_semantics<parallel>, #tpu.dimension_semantics<arbitrary>], iteration_bounds = array<i64: 1, 1>, scalar_prefetch = 0 : i64, scratch_operands = 0 : i64, tpu.core_type = #tpu.core_type<tc>, window_params = [{transform_indices = @transform_0, window_bounds = array<i64: 2, 4, 256>}, {transform_indices = @transform_1, window_bounds = array<i64: 1, 4, 1>}, {transform_indices = @transform_2, window_bounds = array<i64: 1, 4, 1>}]} {
    %c0_i32 = arith.constant 0 : i32
    %0 = arith.cmpi eq, %arg1, %c0_i32 : i32
    %1 = arith.extui %0 : i1 to i32
    %c0_i32_0 = arith.constant 0 : i32
    %2 = arith.cmpi ne, %1, %c0_i32_0 : i32
    scf.if %2 {
      %cst_18 = arith.constant 0.000000e+00 : f32
      %19 = vector.broadcast %cst_18 : f32 to vector<1x4x1xf32>
      %c0_19 = arith.constant 0 : index
      %c0_20 = arith.constant 0 : index
      %c0_21 = arith.constant 0 : index
      %20 = vector.load %arg3[%c0_19, %c0_20, %c0_21] : memref<1x4x1xf32, #tpu.memory_space<vmem>>, vector<1x4x1xf32>
      tpu.vector_store %arg3[%c0_19, %c0_20, %c0_21], %19 {strides = array<i32>} : memref<1x4x1xf32, #tpu.memory_space<vmem>>, vector<1x4x1xf32>,
      %cst_22 = arith.constant 0.000000e+00 : f32
      %21 = vector.broadcast %cst_22 : f32 to vector<1x4x1xf32>
      %c0_23 = arith.constant 0 : index
      %c0_24 = arith.constant 0 : index
      %c0_25 = arith.constant 0 : index
      %22 = vector.load %arg4[%c0_23, %c0_24, %c0_25] : memref<1x4x1xf32, #tpu.memory_space<vmem>>, vector<1x4x1xf32>
      tpu.vector_store %arg4[%c0_23, %c0_24, %c0_25], %21 {strides = array<i32>} : memref<1x4x1xf32, #tpu.memory_space<vmem>>, vector<1x4x1xf32>,
    } else {
    }
    %c0 = arith.constant 0 : index
    %c0_1 = arith.constant 0 : index
    %c0_2 = arith.constant 0 : index
    %3 = vector.load %arg2[%c0, %c0_1, %c0_2] : memref<2x4x256xf32, #tpu.memory_space<vmem>>, vector<2x4x256xf32>
    %cst = arith.constant dense<0.000000e+00> : vector<2x4xf32>
    %4 = vector.multi_reduction <add>, %3, %cst [2] : vector<2x4x256xf32> to vector<2x4xf32>
    %5 = vector.shape_cast %4 : vector<2x4xf32> to vector<2x4x1xf32>
    %6 = arith.mulf %3, %3 : vector<2x4x256xf32>
    %cst_3 = arith.constant dense<0.000000e+00> : vector<2x4xf32>
    %7 = vector.multi_reduction <add>, %6, %cst_3 [2] : vector<2x4x256xf32> to vector<2x4xf32>
    %8 = vector.shape_cast %7 : vector<2x4xf32> to vector<2x4x1xf32>
    %c0_4 = arith.constant 0 : index
    %c0_5 = arith.constant 0 : index
    %c0_6 = arith.constant 0 : index
    %9 = vector.load %arg3[%c0_4, %c0_5, %c0_6] : memref<1x4x1xf32, #tpu.memory_space<vmem>>, vector<1x4x1xf32>
    %cst_7 = arith.constant dense<0.000000e+00> : vector<4x1xf32>
    %10 = vector.multi_reduction <add>, %5, %cst_7 [0] : vector<2x4x1xf32> to vector<4x1xf32>
    %11 = vector.shape_cast %10 : vector<4x1xf32> to vector<1x4x1xf32>
    %12 = arith.addf %9, %11 : vector<1x4x1xf32>
    %c0_8 = arith.constant 0 : index
    %c0_9 = arith.constant 0 : index
    %c0_10 = arith.constant 0 : index
    %13 = vector.load %arg3[%c0_8, %c0_9, %c0_10] : memref<1x4x1xf32, #tpu.memory_space<vmem>>, vector<1x4x1xf32>
    tpu.vector_store %arg3[%c0_8, %c0_9, %c0_10], %12 {strides = array<i32>} : memref<1x4x1xf32, #tpu.memory_space<vmem>>, vector<1x4x1xf32>,
    %c0_11 = arith.constant 0 : index
    %c0_12 = arith.constant 0 : index
    %c0_13 = arith.constant 0 : index
    %14 = vector.load %arg4[%c0_11, %c0_12, %c0_13] : memref<1x4x1xf32, #tpu.memory_space<vmem>>, vector<1x4x1xf32>
    %cst_14 = arith.constant dense<0.000000e+00> : vector<4x1xf32>
    %15 = vector.multi_reduction <add>, %8, %cst_14 [0] : vector<2x4x1xf32> to vector<4x1xf32>
    %16 = vector.shape_cast %15 : vector<4x1xf32> to vector<1x4x1xf32>
    %17 = arith.addf %14, %16 : vector<1x4x1xf32>
    %c0_15 = arith.constant 0 : index
    %c0_16 = arith.constant 0 : index
    %c0_17 = arith.constant 0 : index
    %18 = vector.load %arg4[%c0_15, %c0_16, %c0_17] : memref<1x4x1xf32, #tpu.memory_space<vmem>>, vector<1x4x1xf32>
    tpu.vector_store %arg4[%c0_15, %c0_16, %c0_17], %17 {strides = array<i32>} : memref<1x4x1xf32, #tpu.memory_space<vmem>>, vector<1x4x1xf32>,
    return
  }
  func.func @transform_0(%arg0: i32, %arg1: i32) -> (i32, i32, i32) {
    %c0_i32 = arith.constant 0 : i32
    %c0_i32_0 = arith.constant 0 : i32
    return %arg0, %c0_i32, %arg1 : i32, i32, i32
  }
  func.func @transform_1(%arg0: i32, %arg1: i32) -> (i32, i32, i32) {
    %c0_i32 = arith.constant 0 : i32
    %c0_i32_0 = arith.constant 0 : i32
    %c0_i32_1 = arith.constant 0 : i32
    return %arg0, %c0_i32, %c0_i32_0 : i32, i32, i32
  }
  func.func @transform_2(%arg0: i32, %arg1: i32) -> (i32, i32, i32) {
    %c0_i32 = arith.constant 0 : i32
    %c0_i32_0 = arith.constant 0 : i32
    %c0_i32_1 = arith.constant 0 : i32
    return %arg0, %c0_i32, %c0_i32_0 : i32, i32, i32
  }
}

module attributes {stable_mosaic.version = 11 : i64} {
  func.func @_normalize_kernel(%arg0: i32, %arg1: i32, %arg2: memref<2x4x256xf32, #tpu.memory_space<vmem>>, %arg3: memref<4x1xf32, #tpu.memory_space<vmem>>, %arg4: memref<4x1xf32, #tpu.memory_space<vmem>>, %arg5: memref<2x4x256xf32, #tpu.memory_space<vmem>>) attributes {dimension_semantics = [#tpu.dimension_semantics<parallel>, #tpu.dimension_semantics<parallel>], iteration_bounds = array<i64: 1, 1>, scalar_prefetch = 0 : i64, scratch_operands = 0 : i64, tpu.core_type = #tpu.core_type<tc>, window_params = [{transform_indices = @transform_0, window_bounds = array<i64: 2, 4, 256>}, {pipeline_mode = #tpu.pipeline_mode<synchronous>, transform_indices = @transform_1, window_bounds = array<i64: 4, 1>}, {pipeline_mode = #tpu.pipeline_mode<synchronous>, transform_indices = @transform_2, window_bounds = array<i64: 4, 1>}, {transform_indices = @transform_3, window_bounds = array<i64: 2, 4, 256>}]} {
    %c0 = arith.constant 0 : index
    %c0_0 = arith.constant 0 : index
    %c0_1 = arith.constant 0 : index
    %0 = vector.load %arg2[%c0, %c0_0, %c0_1] : memref<2x4x256xf32, #tpu.memory_space<vmem>>, vector<2x4x256xf32>
    %c0_2 = arith.constant 0 : index
    %c0_3 = arith.constant 0 : index
    %1 = vector.load %arg3[%c0_2, %c0_3] : memref<4x1xf32, #tpu.memory_space<vmem>>, vector<4x1xf32>
    %2 = vector.shape_cast %1 : vector<4x1xf32> to vector<1x4x1xf32>
    %3 = vector.broadcast %2 : vector<1x4x1xf32> to vector<2x4x256xf32>
    %4 = arith.subf %0, %3 : vector<2x4x256xf32>
    %c0_4 = arith.constant 0 : index
    %c0_5 = arith.constant 0 : index
    %5 = vector.load %arg4[%c0_4, %c0_5] : memref<4x1xf32, #tpu.memory_space<vmem>>, vector<4x1xf32>
    %6 = vector.shape_cast %5 : vector<4x1xf32> to vector<1x4x1xf32>
    %7 = vector.broadcast %6 : vector<1x4x1xf32> to vector<2x4x256xf32>
    %8 = arith.mulf %4, %7 : vector<2x4x256xf32>
    %c0_6 = arith.constant 0 : index
    %c0_7 = arith.constant 0 : index
    %c0_8 = arith.constant 0 : index
    %9 = vector.load %arg5[%c0_6, %c0_7, %c0_8] : memref<2x4x256xf32, #tpu.memory_space<vmem>>, vector<2x4x256xf32>
    tpu.vector_store %arg5[%c0_6, %c0_7, %c0_8], %8 {strides = array<i32>} : memref<2x4x256xf32, #tpu.memory_space<vmem>>, vector<2x4x256xf32>,
    return
  }
  func.func @transform_0(%arg0: i32, %arg1: i32) -> (i32, i32, i32) {
    %c0_i32 = arith.constant 0 : i32
    %c0_i32_0 = arith.constant 0 : i32
    return %arg0, %c0_i32, %arg1 : i32, i32, i32
  }
  func.func @transform_1(%arg0: i32, %arg1: i32) -> (i32, i32) {
    %c0_i32 = arith.constant 0 : i32
    %c0_i32_0 = arith.constant 0 : i32
    %c0_i32_1 = arith.constant 0 : i32
    return %c0_i32, %c0_i32_0 : i32, i32
  }
  func.func @transform_2(%arg0: i32, %arg1: i32) -> (i32, i32) {
    %c0_i32 = arith.constant 0 : i32
    %c0_i32_0 = arith.constant 0 : i32
    %c0_i32_1 = arith.constant 0 : i32
    return %c0_i32, %c0_i32_0 : i32, i32
  }
  func.func @transform_3(%arg0: i32, %arg1: i32) -> (i32, i32, i32) {
    %c0_i32 = arith.constant 0 : i32
    %c0_i32_0 = arith.constant 0 : i32
    return %arg0, %c0_i32, %arg1 : i32, i32, i32
  }
}

</mosaic_0001>

<bundles_post_ra>
// kernel: norm_layer_forward.3
= control target key start
LH: loop header
LB: loop body
LE: loop exit
PB: predicated region body
PF: predicated region fallthrough
CT: control target
= control target key end

     0   :  { %v55_v0 = vmov 0   ;;  %v56_v3 = vmov 839922192   ;;  %v24_v5 = vlaneseq  ;;  %s95_s1 = inlined_call_operand.vmem [shape: f32[4,1], index: 1, kind: input, shape index: {}]   ;;  %s96_s2 = inlined_call_operand.vmem [shape: f32[4,1], index: 2, kind: input, shape index: {}]   ;;  %s97_s0 = inlined_call_operand.vmem [shape: f32[2,4,256], index: 0, kind: input, shape index: {}]   ;;  %s98_s3 = inlined_call_operand.vmem [shape: f32[2,4,256], index: 3, kind: output, shape index: {}]  }
   0x1   :  { %54 = vset.pattern.permute.xlu0 %v55_v0  ;;  %v16_v1 = vld [vmem:[%s95_s1] sm:$0xf]  ;;  %v22_v4 = vunpack.c.l.s4 %v56_v3  ;;  %v15_v12 = vld [vmem:[%s97_s0 + $0x8] sm:$0xff] }
   0x2   :  { %19 = vperm.xlu0 %54, %v16_v1   ;;  %v31_v2 = vld [vmem:[%s96_s2] sm:$0xf]  ;;  %v25_v7 = vshrl.u32 %v24_v5, 7 }
   0x3   :  { %v23_v6 = vunpack.c.0.s8 %v22_v4  ;;  %v14_v11 = vld [vmem:[%s97_s0] sm:$0xff] }
   0x5   :  { %v26_v8 = vsub.s32 %v23_v6, %v25_v7 }
   0x6   :  { %34 = vperm.xlu0 %54, %v31_v2  }
  0x81   :  { %v20_v9 = vpop.permute.xlu0 %19 }
  0x82   :  { %v27_v10 = vrot.slane %v20_v9, %v26_v8 }
  0x84   :  { %v29_v14 = vsub.f32 %v14_v11, %v27_v10  ;;  %v30_v15 = vsub.f32 %v15_v12, %v27_v10 }
  0x85   :  { %v35_v13 = vpop.permute.xlu0 %34 }
  0x86   :  { %v42_v16 = vrot.slane %v35_v13, %v26_v8 }
  0x88   :  { %v44_v17 = vmul.f32 %v42_v16, %v29_v14  ;;  %v45_v18 = vmul.f32 %v42_v16, %v30_v15 }
  0x8a   :  { %46 = vst [vmem:[%s98_s3] sm:$0xff] %v44_v17  ;;  %47 = vst [vmem:[%s98_s3 + $0x8] sm:$0xff] %v45_v18 }

// kernel: norm_layer_forward.2
= control target key start
LH: loop header
LB: loop body
LE: loop exit
PB: predicated region body
PF: predicated region fallthrough
CT: control target
= control target key end

     0   :  { %vm25_vm0 = vcmask 1043456   ;;  %vm14_vm1 = vcmask 3072   ;;  %v78_v20 = vmov 0.0   ;;  %s134_s0 = inlined_call_operand.vmem [shape: f32[2,4,256], index: 0, kind: input, shape index: {}]   ;;  %s135_s1 = inlined_call_operand.vmem [shape: f32[1,4,1], index: 1, kind: output, shape index: {0}]   ;;  %s136_s2 = inlined_call_operand.vmem [shape: f32[1,4,1], index: 2, kind: output, shape index: {1}]  }
   0x1   :  { %v17_v0 = vld [vmem:[%s134_s0] sm:$0xff]  ;;  %v18_v1 = vld [vmem:[%s134_s0 + $0x8] sm:$0xff]  ;;  %15 = vst.msk [vmem:[%s135_s1] sm:$0xf] %vm14_vm1, %v78_v20  ;;  %16 = vst.msk [vmem:[%s136_s2] sm:$0xf] %vm14_vm1, %v78_v20 }
   0x2   :  { %v21_v2 = vcombine.high %v17_v0, %v17_v0  ;;  %v26_v3 = vsel %vm25_vm0, %v17_v0, 0.0  ;;  %v36_v4 = vmul.f32 %v17_v0, %v17_v0  ;;  %v22_v5 = vcombine.high %v18_v1, %v18_v1 }
   0x3   :  { %v31_v6 = vsel %vm25_vm0, %v18_v1, 0.0  ;;  %v37_v7 = vmul.f32 %v18_v1, %v18_v1 }
   0x4   :  { %v27_v8 = vsel %vm25_vm0, %v21_v2, 0.0  ;;  %v40_v9 = vcombine.high %v36_v4, %v36_v4  ;;  %v44_v10 = vsel %vm25_vm0, %v36_v4, 0.0  ;;  %v32_v11 = vsel %vm25_vm0, %v22_v5, 0.0 }
   0x5   :  { %v28_v12 = vadd.f32 %v27_v8, %v26_v3  ;;  %v41_v13 = vcombine.high %v37_v7, %v37_v7  ;;  %v49_v15 = vsel %vm25_vm0, %v37_v7, 0.0  ;;  %v33_v17 = vadd.f32 %v32_v11, %v31_v6 }
   0x6   :  { %v45_v14 = vsel %vm25_vm0, %v40_v9, 0.0 }
   0x7   :  { %29 = vadd.xlane.f32.xlu0 %v28_v12  ;;  %v46_v16 = vadd.f32 %v45_v14, %v44_v10  ;;  %v50_v18 = vsel %vm25_vm0, %v41_v13, 0.0 }
   0x8   :  { %v51_v19 = vadd.f32 %v50_v18, %v49_v15  ;;  %v54_v25 = vld [vmem:[%s135_s1] sm:$0xf] }
   0x9   :  { %47 = vadd.xlane.f32.xlu1 %v46_v16  ;;  %v61_v30 = vld [vmem:[%s136_s2] sm:$0xf] }
   0xb   :  { %34 = vadd.xlane.f32.xlu0 %v33_v17 }
   0xd   :  { %52 = vadd.xlane.f32.xlu1 %v51_v19 }
  0x94   :  { %v30_v21 = vpop.xlane.xlu0 %29 }
  0x95   :  { %v55_v24 = vsel %vm25_vm0, %v30_v21, 0.0 }
  0x96   :  { %v48_v22 = vpop.xlane.xlu1 %47 }
  0x97   :  { %v62_v29 = vsel %vm25_vm0, %v48_v22, 0.0 }
  0x98   :  { %v35_v23 = vpop.xlane.xlu0 %34 }
  0x99   :  { %v56_v26 = vsel %vm25_vm0, %v35_v23, 0.0 }
  0x9a   :  { %v57_v27 = vadd.f32 %v56_v26, %v55_v24  ;;  %v53_v28 = vpop.xlane.xlu1 %52 }
  0x9b   :  { %v63_v31 = vsel %vm25_vm0, %v53_v28, 0.0 }
  0x9c   :  { %v58_v32 = vadd.f32 %v57_v27, %v54_v25  ;;  %v64_v33 = vadd.f32 %v63_v31, %v62_v29 }
  0x9e   :  { %60 = vst.msk [vmem:[%s135_s1] sm:$0xf] %vm14_vm1, %v58_v32  ;;  %v65_v34 = vadd.f32 %v64_v33, %v61_v30 }
  0xa0   :  { %66 = vst.msk [vmem:[%s136_s2] sm:$0xf] %vm14_vm1, %v65_v34 }

</bundles_post_ra>
